<compile_context>
chip_gen: v5e
topology: v5e:2x2
jax: 0.10.0
libtpu: 0.0.40
codegen_flags: <defaults>
</compile_context>

<pallas_src>
import functools

import numpy as np
import jax
import jax.numpy as jnp
from jax.experimental import pallas as pl
from jax.experimental.pallas import tpu as pltpu


def _round_up(x, m):
    return ((x + m - 1) // m) * m


def _latent_kernel(z_ref, we_ref, be_ref, wd_ref, bd_ref, em_ref, sm_ref, en_ref,
                   zout_ref, zenc_ref, lse_ref, m_sc, l_sc,
                   *, n_valid, n_padded, block_n, inner):
    """Fused multi-latent encoder/decoder + MXU distances + online logsumexp.

    Grid = (num_splits [parallel], inner [arbitrary, reduction over batch tiles]).

    z_ref    : (TN, D)       input batch tile
    we_ref   : (D, L*D)      fused encoder weight (transposed)
    be_ref   : (1, L*D)      fused encoder bias
    wd_ref   : (L*D, D)      fused decoder weight (transposed)
    bd_ref   : (1, D)        decoder bias
    em_ref   : (L*D, L*M)    block-diag codebook, pre-multiplied by -2*alpha/T
    sm_ref   : (L*D, L*M)    block-diag ones,     pre-multiplied by  alpha/T
    en_ref   : (1, L*M)      codebook squared norms, pre-multiplied by alpha/T
    zout_ref : (TN, D)       decoded z tile
    zenc_ref : (TN, L*D)     encoder output tile (lane-dense z_multi)
    lse_ref  : (1, 1, L*M)   per-split logsumexp over the batch axis
    m_sc,l_sc: (1, L*M)      online-LSE running max / running sum (VMEM scratch)
    """
    i = pl.program_id(1)

    @pl.when(i == 0)
    def _init():
        m_sc[...] = jnp.full(m_sc.shape, -jnp.inf, dtype=m_sc.dtype)
        l_sc[...] = jnp.zeros(l_sc.shape, dtype=l_sc.dtype)

    # Fused encoder (lane-dense L*D output) and decoder -- both on the MXU.
    zenc = jnp.dot(z_ref[...], we_ref[...],
                   preferred_element_type=jnp.float32) + be_ref[...]
    zenc_ref[...] = zenc
    zout_ref[...] = jnp.dot(zenc, wd_ref[...],
                            preferred_element_type=jnp.float32) + bd_ref[...]

    # Scaled squared distances via the MXU:
    #   s[n, l*M + m] = (alpha/T) * || zm_l[n] - e_l[m] ||^2
    s = (jnp.dot(zenc, em_ref[...], preferred_element_type=jnp.float32)
         + jnp.dot(zenc * zenc, sm_ref[...], preferred_element_type=jnp.float32)
         + en_ref[...])

    if n_valid != n_padded:   # static Python branch: mask padded batch rows
        row0 = (pl.program_id(0) * inner + i) * block_n
        rows = row0 + jax.lax.broadcasted_iota(jnp.int32, s.shape, 0)
        s = jnp.where(rows < n_valid, s, -jnp.inf)

    # Online logsumexp over the batch (row) axis.
    m_tile = jnp.max(s, axis=0, keepdims=True)
    m_new = jnp.maximum(m_sc[...], m_tile)
    m_safe = jnp.where(m_new > -jnp.inf, m_new, 0.0)   # avoid inf-inf on empty tiles
    l_sc[...] = (l_sc[...] * jnp.exp(m_sc[...] - m_safe)
                 + jnp.sum(jnp.exp(s - m_safe), axis=0, keepdims=True))
    m_sc[...] = m_new

    @pl.when(i == inner - 1)
    def _finalize():
        lse_ref[0] = m_sc[...] + jnp.log(l_sc[...])


def latent_forward(z, e, W_enc_T, b_enc, W_dec_T, b_dec, log_sigma,
                   temperature=1.0, block_n=512, num_splits=2):
    """Forward pass of the multi-LSE Latent module, fused into one Pallas kernel."""
    N, D = z.shape
    L, M, _ = e.shape
    f32 = jnp.float32

    # ---- batch tiling --------------------------------------------------------
    TN = _round_up(min(block_n, max(N, 8)), 8)
    N_pad = _round_up(N, TN * num_splits)
    inner = N_pad // (TN * num_splits)
    z_pad = jnp.pad(z, ((0, N_pad - N), (0, 0))) if N_pad != N else z

    # ---- fold scale = alpha/T into the distance operands (wrapper glue) -----
    alpha = -1.0 / (2.0 * jnp.exp(log_sigma[0].astype(f32)) ** 2)
    scale = alpha / temperature

    e_T = jnp.swapaxes(e, 1, 2).astype(f32)                       # (L, D, M)
    eye = jnp.eye(L, dtype=f32)
    E_bd = jnp.einsum('lk,ldm->ldkm', eye, e_T).reshape(L * D, L * M)
    S_bd = jnp.einsum('lk,dm->ldkm', eye, jnp.ones((D, M), f32)).reshape(L * D, L * M)
    E_mat = (-2.0 * scale) * E_bd                                 # (L*D, L*M)
    S_mat = scale * S_bd                                          # (L*D, L*M)
    e_norm = scale * jnp.sum(e.astype(f32) ** 2, axis=-1).reshape(1, L * M)

    be2 = b_enc.reshape(1, L * D).astype(f32)
    bd2 = b_dec.reshape(1, D).astype(f32)

    kernel = functools.partial(_latent_kernel, n_valid=N, n_padded=N_pad,
                               block_n=TN, inner=inner)

    row_idx = lambda p, i: (p * inner + i, 0)
    const_idx = lambda p, i: (0, 0)

    grid_spec = pltpu.PrefetchScalarGridSpec(
        num_scalar_prefetch=0,
        grid=(num_splits, inner),
        in_specs=[
            pl.BlockSpec((TN, D), row_idx),                # z tile
            pl.BlockSpec((D, L * D), const_idx),           # W_enc_T
            pl.BlockSpec((1, L * D), const_idx),           # b_enc
            pl.BlockSpec((L * D, D), const_idx),           # W_dec_T
            pl.BlockSpec((1, D), const_idx),               # b_dec
            pl.BlockSpec((L * D, L * M), const_idx),       # -2*scale * block-diag(e^T)
            pl.BlockSpec((L * D, L * M), const_idx),       #  scale   * block-diag(ones)
            pl.BlockSpec((1, L * M), const_idx),           #  scale   * ||e||^2
        ],
        out_specs=(
            pl.BlockSpec((TN, D), row_idx),                          # decoded z
            pl.BlockSpec((TN, L * D), row_idx),                      # zenc (lane-dense z_multi)
            pl.BlockSpec((1, 1, L * M), lambda p, i: (p, 0, 0)),     # per-split LSE
        ),
        scratch_shapes=[pltpu.VMEM((1, L * M), f32),
                        pltpu.VMEM((1, L * M), f32)],
    )

    out_shapes = (
        jax.ShapeDtypeStruct((N_pad, D), f32),
        jax.ShapeDtypeStruct((N_pad, L * D), f32),
        jax.ShapeDtypeStruct((num_splits, 1, L * M), f32),
    )

    z_dec, zenc_flat, lse_part = pl.pallas_call(
        kernel,
        out_shape=out_shapes,
        grid_spec=grid_spec,
        compiler_params=pltpu.CompilerParams(
            dimension_semantics=("parallel", "arbitrary"),
            vmem_limit_bytes=32 * 1024 * 1024),
    )(z_pad.astype(f32), W_enc_T.astype(f32), be2, W_dec_T.astype(f32), bd2,
      E_mat, S_mat, e_norm)

    # ---- tiny scalar epilogue (JAX glue) -------------------------------------
    lse = jax.scipy.special.logsumexp(lse_part[:, 0, :], axis=0)   # combine splits, (L*M,)
    lse = lse.reshape(L, M)
    loss = -temperature * jnp.mean(lse, axis=1)                    # (L,)
    loss = loss + 0.5 * D * (2.0 * log_sigma[0] - 1.0) + jnp.log(jnp.float32(N))
    lse_loss = jnp.mean(loss)

    z_out = z_dec[:N]
    z_multi = jnp.transpose(zenc_flat[:N].reshape(N, L, D), (1, 0, 2))
    return {'z': z_out, 'z_multi': z_multi, 'lse_loss': lse_loss}


def reference_forward(z, e, W_enc_T, b_enc, W_dec_T, b_dec, log_sigma, temperature):
    """Pure-JAX re-implementation of the torch forward (verification only)."""
    N, D = z.shape
    L, M, _ = e.shape
    hi = jax.lax.Precision.HIGHEST
    zenc = jnp.dot(z, W_enc_T, precision=hi) + b_enc                 # (N, L*D)
    z_out = jnp.dot(zenc, W_dec_T, precision=hi) + b_dec             # (N, D)
    zm = jnp.transpose(zenc.reshape(N, L, D), (1, 0, 2))             # (L, N, D)
    dist = jnp.sum((zm[:, :, None, :] - e[:, None, :, :]) ** 2, axis=3)  # (L, N, M)
    alpha = -1.0 / (2.0 * jnp.exp(log_sigma[0]) ** 2)
    lse = jax.scipy.special.logsumexp(alpha * dist / temperature, axis=1)  # (L, M)
    loss = -jnp.mean(temperature * lse, axis=1)
    loss = loss + 0.5 * D * (2.0 * log_sigma[0] - 1.0) + jnp.log(jnp.float32(N))
    return z_out, zm, jnp.mean(loss)


if __name__ == "__main__":
    # small shapes consistent with the module; N deliberately not a multiple of
    # (block_n * num_splits) so the padding/masking and multi-tile online LSE
    # paths are exercised.
    N, z_dim, n_latents, M = 200, 32, 4, 16
    temperature = 0.7
    init_log_sigma = 0.0

    key = jax.random.PRNGKey(0)
    k_we, k_be, k_wd, k_bd, k_z, k_e = jax.random.split(key, 6)

    # deterministic nn.Linear-style init (uniform +/- 1/sqrt(fan_in))
    bnd_e = 1.0 / np.sqrt(z_dim)
    bnd_d = 1.0 / np.sqrt(n_latents * z_dim)
    W_enc_T = jax.random.uniform(k_we, (z_dim, n_latents * z_dim), jnp.float32, -bnd_e, bnd_e)
    b_enc = jax.random.uniform(k_be, (n_latents * z_dim,), jnp.float32, -bnd_e, bnd_e)
    W_dec_T = jax.random.uniform(k_wd, (n_latents * z_dim, z_dim), jnp.float32, -bnd_d, bnd_d)
    b_dec = jax.random.uniform(k_bd, (z_dim,), jnp.float32, -bnd_d, bnd_d)
    log_sigma = jnp.full((1,), init_log_sigma, jnp.float32)

    z = jax.random.normal(k_z, (N, z_dim), jnp.float32)
    e = jax.random.normal(k_e, (n_latents, M, z_dim), jnp.float32)

    out = latent_forward(z, e, W_enc_T, b_enc, W_dec_T, b_dec, log_sigma,
                         temperature=temperature, block_n=64, num_splits=2)
    out = jax.block_until_ready(out)

    # verify against a pure-JAX reference of the torch semantics
    z_ref_, zm_ref, loss_ref = reference_forward(z, e, W_enc_T, b_enc, W_dec_T, b_dec,
                                                 log_sigma, temperature)
    np.testing.assert_allclose(np.asarray(out['z']), np.asarray(z_ref_), rtol=2e-3, atol=2e-3)
    np.testing.assert_allclose(np.asarray(out['z_multi']), np.asarray(zm_ref), rtol=2e-3, atol=2e-3)
    np.testing.assert_allclose(np.asarray(out['lse_loss']), np.asarray(loss_ref), rtol=2e-3, atol=2e-3)

    print("KERNEL_OK")
</pallas_src>

<mosaic_0001>
module attributes {stable_mosaic.version = 11 : i64} {
  func.func @_latent_kernel(%arg0: i32, %arg1: i32, %arg2: memref<64x32xf32, #tpu.memory_space<vmem>>, %arg3: memref<32x128xf32, #tpu.memory_space<vmem>>, %arg4: memref<1x128xf32, #tpu.memory_space<vmem>>, %arg5: memref<128x32xf32, #tpu.memory_space<vmem>>, %arg6: memref<1x32xf32, #tpu.memory_space<vmem>>, %arg7: memref<128x64xf32, #tpu.memory_space<vmem>>, %arg8: memref<128x64xf32, #tpu.memory_space<vmem>>, %arg9: memref<1x64xf32, #tpu.memory_space<vmem>>, %arg10: memref<64x32xf32, #tpu.memory_space<vmem>>, %arg11: memref<64x128xf32, #tpu.memory_space<vmem>>, %arg12: memref<1x1x64xf32, #tpu.memory_space<vmem>>, %arg13: memref<1x64xf32, #tpu.memory_space<vmem>>, %arg14: memref<1x64xf32, #tpu.memory_space<vmem>>) attributes {dimension_semantics = [#tpu.dimension_semantics<parallel>, #tpu.dimension_semantics<arbitrary>], iteration_bounds = array<i64: 2, 2>, scalar_prefetch = 0 : i64, scratch_operands = 2 : i64, tpu.core_type = #tpu.core_type<tc>, window_params = [{transform_indices = @transform_0, window_bounds = array<i64: 64, 32>}, {pipeline_mode = #tpu.pipeline_mode<synchronous>, transform_indices = @transform_1, window_bounds = array<i64: 32, 128>}, {pipeline_mode = #tpu.pipeline_mode<synchronous>, transform_indices = @transform_2, window_bounds = array<i64: 1, 128>}, {pipeline_mode = #tpu.pipeline_mode<synchronous>, transform_indices = @transform_3, window_bounds = array<i64: 128, 32>}, {pipeline_mode = #tpu.pipeline_mode<synchronous>, transform_indices = @transform_4, window_bounds = array<i64: 1, 32>}, {pipeline_mode = #tpu.pipeline_mode<synchronous>, transform_indices = @transform_5, window_bounds = array<i64: 128, 64>}, {pipeline_mode = #tpu.pipeline_mode<synchronous>, transform_indices = @transform_6, window_bounds = array<i64: 128, 64>}, {pipeline_mode = #tpu.pipeline_mode<synchronous>, transform_indices = @transform_7, window_bounds = array<i64: 1, 64>}, {transform_indices = @transform_8, window_bounds = array<i64: 64, 32>}, {transform_indices = @transform_9, window_bounds = array<i64: 64, 128>}, {transform_indices = @transform_10, window_bounds = array<i64: 1, 1, 64>}]} {
    %c0_i32 = arith.constant 0 : i32
    %0 = arith.cmpi eq, %arg1, %c0_i32 : i32
    %1 = arith.extui %0 : i1 to i32
    %c0_i32_0 = arith.constant 0 : i32
    %2 = arith.cmpi ne, %1, %c0_i32_0 : i32
    scf.if %2 {
      %cst_39 = arith.constant 0xFF800000 : f32
      %59 = vector.broadcast %cst_39 : f32 to vector<1x64xf32>
      %c0_40 = arith.constant 0 : index
      %c0_41 = arith.constant 0 : index
      %60 = vector.load %arg13[%c0_40, %c0_41] : memref<1x64xf32, #tpu.memory_space<vmem>>, vector<1x64xf32>
      tpu.vector_store %arg13[%c0_40, %c0_41], %59 {strides = array<i32>} : memref<1x64xf32, #tpu.memory_space<vmem>>, vector<1x64xf32>,
      %cst_42 = arith.constant 0.000000e+00 : f32
      %61 = vector.broadcast %cst_42 : f32 to vector<1x64xf32>
      %c0_43 = arith.constant 0 : index
      %c0_44 = arith.constant 0 : index
      %62 = vector.load %arg14[%c0_43, %c0_44] : memref<1x64xf32, #tpu.memory_space<vmem>>, vector<1x64xf32>
      tpu.vector_store %arg14[%c0_43, %c0_44], %61 {strides = array<i32>} : memref<1x64xf32, #tpu.memory_space<vmem>>, vector<1x64xf32>,
    } else {
    }
    %c0 = arith.constant 0 : index
    %c0_1 = arith.constant 0 : index
    %3 = vector.load %arg2[%c0, %c0_1] : memref<64x32xf32, #tpu.memory_space<vmem>>, vector<64x32xf32>
    %c0_2 = arith.constant 0 : index
    %c0_3 = arith.constant 0 : index
    %4 = vector.load %arg3[%c0_2, %c0_3] : memref<32x128xf32, #tpu.memory_space<vmem>>, vector<32x128xf32>
    %cst = arith.constant dense<0.000000e+00> : vector<64x128xf32>
    %5 = tpu.matmul %3, %4, %cst {dimension_numbers = #tpu.dot_dimension_numbers<[1], [0], [0], [1], [0, 0, 1, 1], [], []>} : vector<64x32xf32>, vector<32x128xf32>, vector<64x128xf32> -> vector<64x128xf32>
    %c0_4 = arith.constant 0 : index
    %c0_5 = arith.constant 0 : index
    %6 = vector.load %arg4[%c0_4, %c0_5] : memref<1x128xf32, #tpu.memory_space<vmem>>, vector<1x128xf32>
    %7 = vector.broadcast %6 : vector<1x128xf32> to vector<64x128xf32>
    %8 = arith.addf %5, %7 : vector<64x128xf32>
    %c0_6 = arith.constant 0 : index
    %c0_7 = arith.constant 0 : index
    %9 = vector.load %arg11[%c0_6, %c0_7] : memref<64x128xf32, #tpu.memory_space<vmem>>, vector<64x128xf32>
    tpu.vector_store %arg11[%c0_6, %c0_7], %8 {strides = array<i32>} : memref<64x128xf32, #tpu.memory_space<vmem>>, vector<64x128xf32>,
    %c0_8 = arith.constant 0 : index
    %c0_9 = arith.constant 0 : index
    %10 = vector.load %arg5[%c0_8, %c0_9] : memref<128x32xf32, #tpu.memory_space<vmem>>, vector<128x32xf32>
    %cst_10 = arith.constant dense<0.000000e+00> : vector<64x32xf32>
    %11 = tpu.matmul %8, %10, %cst_10 {dimension_numbers = #tpu.dot_dimension_numbers<[1], [0], [0], [1], [0, 0, 1, 1], [], []>} : vector<64x128xf32>, vector<128x32xf32>, vector<64x32xf32> -> vector<64x32xf32>
    %c0_11 = arith.constant 0 : index
    %c0_12 = arith.constant 0 : index
    %12 = vector.load %arg6[%c0_11, %c0_12] : memref<1x32xf32, #tpu.memory_space<vmem>>, vector<1x32xf32>
    %13 = vector.broadcast %12 : vector<1x32xf32> to vector<64x32xf32>
    %14 = arith.addf %11, %13 : vector<64x32xf32>
    %c0_13 = arith.constant 0 : index
    %c0_14 = arith.constant 0 : index
    %15 = vector.load %arg10[%c0_13, %c0_14] : memref<64x32xf32, #tpu.memory_space<vmem>>, vector<64x32xf32>
    tpu.vector_store %arg10[%c0_13, %c0_14], %14 {strides = array<i32>} : memref<64x32xf32, #tpu.memory_space<vmem>>, vector<64x32xf32>,
    %c0_15 = arith.constant 0 : index
    %c0_16 = arith.constant 0 : index
    %16 = vector.load %arg7[%c0_15, %c0_16] : memref<128x64xf32, #tpu.memory_space<vmem>>, vector<128x64xf32>
    %cst_17 = arith.constant dense<0.000000e+00> : vector<64x64xf32>
    %17 = tpu.matmul %8, %16, %cst_17 {dimension_numbers = #tpu.dot_dimension_numbers<[1], [0], [0], [1], [0, 0, 1, 1], [], []>} : vector<64x128xf32>, vector<128x64xf32>, vector<64x64xf32> -> vector<64x64xf32>
    %18 = arith.mulf %8, %8 : vector<64x128xf32>
    %c0_18 = arith.constant 0 : index
    %c0_19 = arith.constant 0 : index
    %19 = vector.load %arg8[%c0_18, %c0_19] : memref<128x64xf32, #tpu.memory_space<vmem>>, vector<128x64xf32>
    %cst_20 = arith.constant dense<0.000000e+00> : vector<64x64xf32>
    %20 = tpu.matmul %18, %19, %cst_20 {dimension_numbers = #tpu.dot_dimension_numbers<[1], [0], [0], [1], [0, 0, 1, 1], [], []>} : vector<64x128xf32>, vector<128x64xf32>, vector<64x64xf32> -> vector<64x64xf32>
    %21 = arith.addf %17, %20 : vector<64x64xf32>
    %c0_21 = arith.constant 0 : index
    %c0_22 = arith.constant 0 : index
    %22 = vector.load %arg9[%c0_21, %c0_22] : memref<1x64xf32, #tpu.memory_space<vmem>>, vector<1x64xf32>
    %23 = vector.broadcast %22 : vector<1x64xf32> to vector<64x64xf32>
    %24 = arith.addf %21, %23 : vector<64x64xf32>
    %c2_i32 = arith.constant 2 : i32
    %25 = arith.muli %arg0, %c2_i32 : i32
    %26 = arith.addi %25, %arg1 : i32
    %c64_i32 = arith.constant 64 : i32
    %27 = arith.muli %26, %c64_i32 : i32
    %28 = tpu.iota {dimensions = array<i32: 0>} : vector<64x64xi32>
    %29 = vector.broadcast %27 : i32 to vector<64x64xi32>
    %30 = arith.addi %29, %28 : vector<64x64xi32>
    %c200_i32 = arith.constant 200 : i32
    %31 = vector.broadcast %c200_i32 : i32 to vector<64x64xi32>
    %32 = arith.cmpi slt, %30, %31 : vector<64x64xi32>
    %cst_23 = arith.constant 0xFF800000 : f32
    %33 = vector.broadcast %cst_23 : f32 to vector<64x64xf32>
    %34 = arith.select %32, %24, %33 : vector<64x64xi1>, vector<64x64xf32>
    %cst_24 = arith.constant dense<0xFF800000> : vector<64xf32>
    %35 = vector.multi_reduction <maximumf>, %34, %cst_24 [0] : vector<64x64xf32> to vector<64xf32>
    %36 = vector.shape_cast %35 : vector<64xf32> to vector<1x64xf32>
    %c0_25 = arith.constant 0 : index
    %c0_26 = arith.constant 0 : index
    %37 = vector.load %arg13[%c0_25, %c0_26] : memref<1x64xf32, #tpu.memory_space<vmem>>, vector<1x64xf32>
    %38 = arith.maximumf %37, %36 : vector<1x64xf32>
    %cst_27 = arith.constant 0xFF800000 : f32
    %39 = vector.broadcast %cst_27 : f32 to vector<1x64xf32>
    %40 = arith.cmpf ogt, %38, %39 : vector<1x64xf32>
    %cst_28 = arith.constant 0.000000e+00 : f32
    %41 = vector.broadcast %cst_28 : f32 to vector<1x64xf32>
    %42 = arith.select %40, %38, %41 : vector<1x64xi1>, vector<1x64xf32>
    %c0_29 = arith.constant 0 : index
    %c0_30 = arith.constant 0 : index
    %43 = vector.load %arg14[%c0_29, %c0_30] : memref<1x64xf32, #tpu.memory_space<vmem>>, vector<1x64xf32>
    %c0_31 = arith.constant 0 : index
    %c0_32 = arith.constant 0 : index
    %44 = vector.load %arg13[%c0_31, %c0_32] : memref<1x64xf32, #tpu.memory_space<vmem>>, vector<1x64xf32>
    %45 = arith.subf %44, %42 : vector<1x64xf32>
    %46 = math.exp %45 : vector<1x64xf32>
    %47 = arith.mulf %43, %46 : vector<1x64xf32>
    %48 = vector.broadcast %42 : vector<1x64xf32> to vector<64x64xf32>
    %49 = arith.subf %34, %48 : vector<64x64xf32>
    %50 = math.exp %49 : vector<64x64xf32>
    %cst_33 = arith.constant dense<0.000000e+00> : vector<64xf32>
    %51 = vector.multi_reduction <add>, %50, %cst_33 [0] : vector<64x64xf32> to vector<64xf32>
    %52 = vector.shape_cast %51 : vector<64xf32> to vector<1x64xf32>
    %53 = arith.addf %47, %52 : vector<1x64xf32>
    %c0_34 = arith.constant 0 : index
    %c0_35 = arith.constant 0 : index
    %54 = vector.load %arg14[%c0_34, %c0_35] : memref<1x64xf32, #tpu.memory_space<vmem>>, vector<1x64xf32>
    tpu.vector_store %arg14[%c0_34, %c0_35], %53 {strides = array<i32>} : memref<1x64xf32, #tpu.memory_space<vmem>>, vector<1x64xf32>,
    %c0_36 = arith.constant 0 : index
    %c0_37 = arith.constant 0 : index
    %55 = vector.load %arg13[%c0_36, %c0_37] : memref<1x64xf32, #tpu.memory_space<vmem>>, vector<1x64xf32>
    tpu.vector_store %arg13[%c0_36, %c0_37], %38 {strides = array<i32>} : memref<1x64xf32, #tpu.memory_space<vmem>>, vector<1x64xf32>,
    %c1_i32 = arith.constant 1 : i32
    %56 = arith.cmpi eq, %arg1, %c1_i32 : i32
    %57 = arith.extui %56 : i1 to i32
    %c0_i32_38 = arith.constant 0 : i32
    %58 = arith.cmpi ne, %57, %c0_i32_38 : i32
    scf.if %58 {
      %c0_39 = arith.constant 0 : index
      %c0_40 = arith.constant 0 : index
      %59 = vector.load %arg13[%c0_39, %c0_40] : memref<1x64xf32, #tpu.memory_space<vmem>>, vector<1x64xf32>
      %c0_41 = arith.constant 0 : index
      %c0_42 = arith.constant 0 : index
      %60 = vector.load %arg14[%c0_41, %c0_42] : memref<1x64xf32, #tpu.memory_space<vmem>>, vector<1x64xf32>
      %61 = math.log %60 : vector<1x64xf32>
      %62 = arith.addf %59, %61 : vector<1x64xf32>
      %c0_43 = arith.constant 0 : index
      %c0_44 = arith.constant 0 : index
      %c0_45 = arith.constant 0 : index
      %63 = vector.load %arg12[%c0_43, %c0_44, %c0_45] : memref<1x1x64xf32, #tpu.memory_space<vmem>>, vector<1x1x64xf32>
      %64 = vector.shape_cast %63 : vector<1x1x64xf32> to vector<1x64xf32>
      %65 = vector.shape_cast %62 : vector<1x64xf32> to vector<1x1x64xf32>
      tpu.vector_store %arg12[%c0_43, %c0_44, %c0_45], %65 {strides = array<i32>} : memref<1x1x64xf32, #tpu.memory_space<vmem>>, vector<1x1x64xf32>,
    } else {
    }
    return
  }
  func.func @transform_0(%arg0: i32, %arg1: i32) -> (i32, i32) {
    %c2_i32 = arith.constant 2 : i32
    %0 = arith.muli %arg0, %c2_i32 : i32
    %1 = arith.addi %0, %arg1 : i32
    %c0_i32 = arith.constant 0 : i32
    %c0_i32_0 = arith.constant 0 : i32
    return %1, %c0_i32 : i32, i32
  }
  func.func @transform_1(%arg0: i32, %arg1: i32) -> (i32, i32) {
    %c0_i32 = arith.constant 0 : i32
    %c0_i32_0 = arith.constant 0 : i32
    %c0_i32_1 = arith.constant 0 : i32
    return %c0_i32, %c0_i32_0 : i32, i32
  }
  func.func @transform_2(%arg0: i32, %arg1: i32) -> (i32, i32) {
    %c0_i32 = arith.constant 0 : i32
    %c0_i32_0 = arith.constant 0 : i32
    %c0_i32_1 = arith.constant 0 : i32
    return %c0_i32, %c0_i32_0 : i32, i32
  }
  func.func @transform_3(%arg0: i32, %arg1: i32) -> (i32, i32) {
    %c0_i32 = arith.constant 0 : i32
    %c0_i32_0 = arith.constant 0 : i32
    %c0_i32_1 = arith.constant 0 : i32
    return %c0_i32, %c0_i32_0 : i32, i32
  }
  func.func @transform_4(%arg0: i32, %arg1: i32) -> (i32, i32) {
    %c0_i32 = arith.constant 0 : i32
    %c0_i32_0 = arith.constant 0 : i32
    %c0_i32_1 = arith.constant 0 : i32
    return %c0_i32, %c0_i32_0 : i32, i32
  }
  func.func @transform_5(%arg0: i32, %arg1: i32) -> (i32, i32) {
    %c0_i32 = arith.constant 0 : i32
    %c0_i32_0 = arith.constant 0 : i32
    %c0_i32_1 = arith.constant 0 : i32
    return %c0_i32, %c0_i32_0 : i32, i32
  }
  func.func @transform_6(%arg0: i32, %arg1: i32) -> (i32, i32) {
    %c0_i32 = arith.constant 0 : i32
    %c0_i32_0 = arith.constant 0 : i32
    %c0_i32_1 = arith.constant 0 : i32
    return %c0_i32, %c0_i32_0 : i32, i32
  }
  func.func @transform_7(%arg0: i32, %arg1: i32) -> (i32, i32) {
    %c0_i32 = arith.constant 0 : i32
    %c0_i32_0 = arith.constant 0 : i32
    %c0_i32_1 = arith.constant 0 : i32
    return %c0_i32, %c0_i32_0 : i32, i32
  }
  func.func @transform_8(%arg0: i32, %arg1: i32) -> (i32, i32) {
    %c2_i32 = arith.constant 2 : i32
    %0 = arith.muli %arg0, %c2_i32 : i32
    %1 = arith.addi %0, %arg1 : i32
    %c0_i32 = arith.constant 0 : i32
    %c0_i32_0 = arith.constant 0 : i32
    return %1, %c0_i32 : i32, i32
  }
  func.func @transform_9(%arg0: i32, %arg1: i32) -> (i32, i32) {
    %c2_i32 = arith.constant 2 : i32
    %0 = arith.muli %arg0, %c2_i32 : i32
    %1 = arith.addi %0, %arg1 : i32
    %c0_i32 = arith.constant 0 : i32
    %c0_i32_0 = arith.constant 0 : i32
    return %1, %c0_i32 : i32, i32
  }
  func.func @transform_10(%arg0: i32, %arg1: i32) -> (i32, i32, i32) {
    %c0_i32 = arith.constant 0 : i32
    %c0_i32_0 = arith.constant 0 : i32
    %c0_i32_1 = arith.constant 0 : i32
    return %arg0, %c0_i32, %c0_i32_0 : i32, i32, i32
  }
}

</mosaic_0001>

<bundles_post_ra>
// kernel: tpu_custom_call.1
= control target key start
LH: loop header
LB: loop body
LE: loop exit
PB: predicated region body
PF: predicated region fallthrough
CT: control target
= control target key end

     0   :  { %s1859_s0 = inlined_call_operand.vmem [shape: f32[256,32], index: 0, kind: input, shape index: {}]   ;;  %s1860_s1 = inlined_call_operand.vmem [shape: f32[32,128], index: 1, kind: input, shape index: {}]   ;;  %s1861_s2 = inlined_call_operand.vmem [shape: f32[1,128], index: 2, kind: input, shape index: {}]   ;;  %s1862_s3 = inlined_call_operand.vmem [shape: f32[128,32], index: 3, kind: input, shape index: {}]   ;;  %s1863_s4 = inlined_call_operand.vmem [shape: f32[1,32], index: 4, kind: input, shape index: {}]   ;;  %s1864_s5 = inlined_call_operand.vmem [shape: f32[128,64], index: 5, kind: input, shape index: {}]   ;;  %s1865_s6 = inlined_call_operand.vmem [shape: f32[128,64], index: 6, kind: input, shape index: {}]   ;;  %s1866_s7 = inlined_call_operand.vmem [shape: f32[1,64], index: 7, kind: input, shape index: {}]   ;;  %s1867_s8 = inlined_call_operand.vmem [shape: f32[256,32], index: 8, kind: output, shape index: {0}]   ;;  %s1868_s9 = inlined_call_operand.hbm [shape: f32[256,128], index: 9, kind: output, shape index: {1}]   ;;  %s1869_s10 = inlined_call_operand.hbm [shape: f32[2,1,64], index: 10, kind: output, shape index: {2}]  }
   0x1   :  { %1881 = sst [smem:[#allocation18_spill]] %s1859_s0 }
   0x2   :  { %1882 = sst [smem:[#allocation19_spill]] %s1860_s1 }
   0x3   :  { %1883 = sst [smem:[#allocation20_spill]] %s1861_s2 }
   0x4   :  { %1884 = sst [smem:[#allocation21_spill]] %s1862_s3 }
   0x5   :  { %1885 = sst [smem:[#allocation22_spill]] %s1863_s4 }
   0x6   :  { %1886 = sst [smem:[#allocation23_spill]] %s1864_s5 }
   0x7   :  { %1887 = sst [smem:[#allocation24_spill]] %s1866_s7 }
   0x8   :  { %1888 = sst [smem:[#allocation25_spill]] %s1868_s9 }
   0x9   :  { %1889 = sst [smem:[#allocation26_spill]] %s1869_s10 }
   0xa   :  { %16 = vsyncpa [#allocation5], 0 }
   0xb   :  { %18 = vsyncpa [#allocation5 + $0x1], 0 }
   0xc   :  { %19 = vsyncpa [#allocation7], 0 }
   0xd   :  { %21 = vsyncpa [#allocation7 + $0x1], 0  ;;  %s1409_s13 = smov 0   ;;  %s1411_s14 = smov 0  }
   0xe   :  { %s1413_s15 = smov 0   ;;  %s1415_s16 = smov 0  }
   0xf   :  { %s1417_s17 = smov 0   ;;  %s1419_s18 = smov 0  }
  0x10   :  { %s1421_s19 = smov 0   ;;  %s1423_s20 = smov 0  }
  0x11   :  { %s1425_s21 = smov 0   ;;  %s1427_s22 = smov 0  }
  0x12   :  { %s1429_s23 = smov 0  }
  0x13 LB: > { %1890 = sst [smem:[#allocation10_spill]] %s1320_s16  ;;  %s1034_s24 = sadd.s32 4294967295, %s1348_s23   ;;  %s1348_s23 = sphi %s1429_s23, %s27_s23   ;;  %s1344_s22 = sphi %s1427_s22, %s1923_s22   ;;  %s1340_s21 = sphi %s1425_s21, %s1922_s21   ;;  %s1336_s20 = sphi %s1423_s20, %s1921_s20   ;;  %s1332_s19 = sphi %s1421_s19, %s1920_s19   ;;  %s1328_s18 = sphi %s1419_s18, %s1929_s18   ;;  %s1324_s17 = sphi %s1417_s17, %s1928_s17   ;;  %s1320_s16 = sphi %s1415_s16, %s1927_s16   ;;  %s1316_s15 = sphi %s1413_s15, %s1926_s15   ;;  %s1312_s14 = sphi %s1411_s14, %s1925_s14   ;;  %s1308_s13 = sphi %s1409_s13, %s1924_s13  }
  0x14   : > { %1891 = sst [smem:[#allocation11_spill]] %s1340_s21  ;;  %s1035_s25 = sadd.s32 4294967294, %s1348_s23  }
  0x15   : > { %1892 = sst [smem:[#allocation12_spill]] %s1344_s22  ;;  %s36_s26 = sadd.s32 1, %s1340_s21 }
  0x16   : > { %s39_s27 = sadd.s32 1, %s1344_s22  ;;  %p37_p0 = scmp.ge.s32.totalorder %s36_s26, 2 }
  0x17   : > { %s1040_s28 = sshll.u32 %s1344_s22, 1  ;;  %s257_s30 = sadd.s32 1, %s1328_s18 }
  0x18   : > { %s251_s29 = sadd.s32 %s1340_s21, %s1040_s28  ;;  %s1931_s26 = smov (%p37_p0, %s36_s26), 0 }
  0x19   : > { %1893 = sst [smem:[#allocation13_spill]] %s1931_s26  ;;  %s1933_s27 = smov (!%p37_p0, %s39_s27), %s1344_s22 }
  0x1a   : > { %p267_p1 = scmp.ne.s32.totalorder %s1328_s18, %s1324_s17  ;;  %p1476_p2 = scmp.eq.s32.totalorder %s1034_s24, 3 }
  0x1b   : > { %p41_p3 = scmp.ge.s32.totalorder %s1933_s27, 2  ;;  %p273_p4 = scmp.ne.s32.totalorder %s1324_s17, %s1320_s16 }
  0x1c   : > { %p1484_p5 = por %p1476_p2, %p267_p1  ;;  %p1488_p6 = scmp.eq.s32.totalorder %s1035_s25, 3 }
  0x1d   : > { %s1935_s27 = smov (%p41_p3, %s1933_s27), 0  ;;  %s283_s21 = sadd.s32 1, %s1316_s15 }
  0x1e   : > { %s1895_s12 = scalar_select %p1484_p5, 1, 0 }
  0x1f   : > { %1898 = sst [smem:[#allocation15_spill]] %s1935_s27  ;;  %p1496_p7 = por %p1488_p6, %p273_p4 }
  0x20   : > { %1896 = sst [smem:[#allocation14_spill]] %s1895_s12  ;;  %s1041_s16 = sshll.u32 %s1935_s27, 1 }
  0x21   : > { %s1899_s24 = scalar_select %p1496_p7, 1, 0 }
  0x22   : > { %s280_s10 = ssub.s32 %s1344_s22, %s1935_s27  ;;  %s253_s25 = sadd.s32 %s1041_s16, %s1931_s26 }
  0x23   : > { %1900 = sst [smem:[#allocation16_spill]] %s1899_s24  ;;  %p281_p8 = scmp.eq.s32.totalorder %s280_s10, 0 }
  0x24   : > { %s254_s12 = ssub.s32 %s251_s29, %s253_s25  ;;  %p293_p9 = scmp.ne.s32.totalorder %s1316_s15, %s1312_s14 }
  0x25   : > { %p255_p10 = scmp.eq.s32.totalorder %s254_s12, 0  ;;  %p299_p11 = scmp.ne.s32.totalorder %s1312_s14, %s1308_s13 }
  0x26   : > { %s1510_s9 = scalar_select %p281_p8, %s1316_s15, %s283_s21  }
  0x27   : > { %s1513_s7 = scalar_select %p255_p10, %s1328_s18, %s257_s30  }
  0x28   : > { %p1517_p12 = por %p293_p9, %p1476_p2  ;;  %p1523_p13 = por %p299_p11, %p1488_p6 }
  0x29   : > { %1901 = sst [smem:[#allocation17_spill]] %s1513_s7  ;;  %p1044_p0 = scmp.ge.s32.totalorder %s1348_s23, 1 }
  0x2a   : > { %p352_p1 = scmp.lt.s32.totalorder %s1348_s23, 5 }
  0x2c   : > { %p353_p3 = pnand %p1044_p0, %p352_p1 }
  0x2d   : > { %s1880_s10 = sand.u32 (!%p353_p3), 1, %s1324_s17   ;;  %s1046_s29 = sshll.u32 (!%p353_p3), %s1336_s20, 1 }
  0x2e   : > { %356 = sbr.rel (%p353_p3) target bundleno = 524 (0x20c), region = 52  ;;  %s1045_s21 = sshll.u32 (!%p353_p3), %s1880_s10, 6 }
  0x2f   : > { %s1535_s30 = sadd.s32 (!%p353_p3), %s1332_s19, %s1046_s29  ;;  %s1904_s0 = sld [smem:[#allocation18_spill]] (!%p353_p3) }
  0x30   : > { %s1047_s11 = sshll.u32 (!%p353_p3), %s1535_s30, 3  ;;  %s1548_s16 = scalar_lea.vmem (!%p353_p3), [#allocation4], %s1045_s21 }
  0x31   : > { %p406_p2 = scmp.lt.s32.totalorder (!%p353_p3), %s1047_s11, 31  ;;  %s1905_s10 = sand.u32 (!%p353_p3), 1, %s1312_s14  }
  0x32   : > { %s1552_s29 = scalar_lea.vmem (!%p353_p3), [#allocation6], %s1905_s10  ;;  %p1052_p4 = scmp.ne.s32.totalorder (!%p353_p3), %s1332_s19, 0 }
  0x33   : > { %s1937_s11 = smov (!%p406_p2, %s1047_s11), 31 }
  0x34   : > { %s1048_s12 = sshll.u32 %s1937_s11, 3  ;;  %429 = sbr.rel (%p1052_p4) target bundleno = 60 (0x3c), region = 56 }
  0x35   : > { %s1541_s27 = scalar_lea.vmem %s1904_s0, %s1048_s12  ;;  %s1546_s7 = scalar_lea.vmem %s1867_s8, %s1048_s12 }
  0x39   : > { %vm430_vm0 = vcmask 516096   ;;  %v1350_v0 = vmov -inf   ;;  %v1351_v1 = vmov 0.0  }
  0x3a   : > { %431 = vst.msk [vmem:[#allocation2] sm:$0x1] %vm430_vm0, %v1350_v0 }
  0x3b   : > { %432 = vst.msk [vmem:[#allocation3] sm:$0x1] %vm430_vm0, %v1351_v1 }
  0x3c PF: > { %s1906_s1 = sld [smem:[#allocation19_spill]]  ;;  %v433_v6 = vld [vmem:[%s1541_s27] sm:$0xff]  ;;  %vm449_vm1 = vcmask 261120   ;;  %v434_v7 = vld [vmem:[%s1541_s27 + $0x8] sm:$0xff]  ;;  %v435_v8 = vld [vmem:[%s1541_s27 + $0x10] sm:$0xff]  ;;  %vm763_vm7 = vcmask 523264  }
  0x3d   : > { %v436_v9 = vld [vmem:[%s1541_s27 + $0x18] sm:$0xff]  ;;  %s1907_s3 = sld [smem:[#allocation21_spill]]  ;;  %v630_v16 = vld [vmem:[%s1865_s6 + $0x70] sm:$0xff]  ;;  %v629_v18 = vld [vmem:[%s1865_s6 + $0x68] sm:$0xff]  ;;  %vm843_vm11 = vcmask 516096   ;;  %p1063_p6 = scmp.ne.s32.totalorder %s1332_s19, 1 }
  0x3e   : > { %s1908_s5 = sld [smem:[#allocation23_spill]]  ;;  %v631_v13 = vld [vmem:[%s1865_s6 + $0x78] sm:$0xff]  ;;  %v437_v21 = vld [vmem:[%s1541_s27 + $0x20] sm:$0xff]  ;;  %v626_v28 = vld [vmem:[%s1865_s6 + $0x50] sm:$0xff] }
  0x3f   : > { %632 = vmatpush.msra.mxu2 %v631_v13  ;;  %v628_v22 = vld [vmem:[%s1865_s6 + $0x60] sm:$0xff]  ;;  %v627_v25 = vld [vmem:[%s1865_s6 + $0x58] sm:$0xff]  ;;  %v625_v31 = vld [vmem:[%s1865_s6 + $0x48] sm:$0xff]  ;;  %s1909_s2 = sld [smem:[#allocation20_spill]] }
  0x40   : > { %v438_v34 = vld [vmem:[%s1541_s27 + $0x28] sm:$0xff]  ;;  %v624_v35 = vld [vmem:[%s1865_s6 + $0x40] sm:$0xff]  ;;  %v623_v38 = vld [vmem:[%s1865_s6 + $0x38] sm:$0xff]  ;;  %s1911_s22 = sld [smem:[#allocation24_spill]] }
  0x41   : > { %633 = vmatpush.msra.mxu2 %v630_v16  ;;  %v622_v41 = vld [vmem:[%s1865_s6 + $0x30] sm:$0xff]  ;;  %v621_v44 = vld [vmem:[%s1865_s6 + $0x28] sm:$0xff]  ;;  %v620_v48 = vld [vmem:[%s1865_s6 + $0x20] sm:$0xff] }
  0x42   : > { %v444_v2 = vld [vmem:[%s1906_s1 + $0x18] sm:$0xff]  ;;  %v443_v3 = vld [vmem:[%s1906_s1 + $0x10] sm:$0xff]  ;;  %v442_v4 = vld [vmem:[%s1906_s1 + $0x8] sm:$0xff] }
  0x43   : > { %486 = vmatpush.msra.mxu0 %v444_v2  ;;  %v441_v5 = vld [vmem:[%s1906_s1] sm:$0xff]  ;;  %v538_v10 = vld [vmem:[%s1907_s3 + $0x78] sm:$0xff]  ;;  %v537_v12 = vld [vmem:[%s1907_s3 + $0x70] sm:$0xff]  ;;  %634 = vmatpush.msra.mxu2 %v629_v18  ;;  %s1062_s1 = sshll.u32 %s1535_s30, 6 }
  0x44   : > { %v607_v11 = vld [vmem:[%s1908_s5 + $0x78] sm:$0xff]  ;;  %543 = vmatpush.msra.mxu1 %v538_v10  ;;  %v606_v14 = vld [vmem:[%s1908_s5 + $0x70] sm:$0xff]  ;;  %v536_v15 = vld [vmem:[%s1907_s3 + $0x68] sm:$0xff] }
  0x45   : > { %487 = vmatpush.msra.mxu0 %v443_v3  ;;  %673 = vmatpush.msra.mxu3 %v607_v11  ;;  %v605_v17 = vld [vmem:[%s1908_s5 + $0x68] sm:$0xff]  ;;  %v535_v19 = vld [vmem:[%s1907_s3 + $0x60] sm:$0xff]  ;;  %v534_v23 = vld [vmem:[%s1907_s3 + $0x58] sm:$0xff] }
  0x46   : > { %544 = vmatpush.msra.mxu1 %v537_v12  ;;  %v604_v20 = vld [vmem:[%s1908_s5 + $0x60] sm:$0xff]  ;;  %v603_v24 = vld [vmem:[%s1908_s5 + $0x58] sm:$0xff]  ;;  %635 = vmatpush.msra.mxu2 %v628_v22  ;;  %v533_v26 = vld [vmem:[%s1907_s3 + $0x50] sm:$0xff] }
  0x47   : > { %488 = vmatpush.msra.mxu0 %v442_v4  ;;  %674 = vmatpush.msra.mxu3 %v606_v14  ;;  %v602_v27 = vld [vmem:[%s1908_s5 + $0x50] sm:$0xff]  ;;  %v532_v29 = vld [vmem:[%s1907_s3 + $0x48] sm:$0xff]  ;;  %v531_v32 = vld [vmem:[%s1907_s3 + $0x40] sm:$0xff] }
  0x48   : > { %545 = vmatpush.msra.mxu1 %v536_v15  ;;  %636 = vmatpush.msra.mxu2 %v627_v25  ;;  %v601_v30 = vld [vmem:[%s1908_s5 + $0x48] sm:$0xff]  ;;  %v600_v33 = vld [vmem:[%s1908_s5 + $0x40] sm:$0xff]  ;;  %v530_v36 = vld [vmem:[%s1907_s3 + $0x38] sm:$0xff] }
  0x49   : > { %489 = vmatpush.msra.mxu0 %v441_v5  ;;  %675 = vmatpush.msra.mxu3 %v605_v17  ;;  %v599_v37 = vld [vmem:[%s1908_s5 + $0x38] sm:$0xff]  ;;  %v529_v39 = vld [vmem:[%s1907_s3 + $0x30] sm:$0xff]  ;;  %v528_v42 = vld [vmem:[%s1907_s3 + $0x28] sm:$0xff] }
  0x4a   : > { %1053 = vmatmul.msk.f32.vlgmr.msra.gmra.mxu0 %vm449_vm1, %v433_v6  ;;  %546 = vmatpush.msra.mxu1 %v535_v19  ;;  %v598_v40 = vld [vmem:[%s1908_s5 + $0x30] sm:$0xff]  ;;  %v597_v43 = vld [vmem:[%s1908_s5 + $0x28] sm:$0xff]  ;;  %v527_v45 = vld [vmem:[%s1907_s3 + $0x20] sm:$0xff] }
  0x4b   : > { %676 = vmatpush.msra.mxu3 %v604_v20  ;;  %637 = vmatpush.msra.mxu2 %v626_v28  ;;  %v596_v46 = vld [vmem:[%s1908_s5 + $0x20] sm:$0xff]  ;;  %v439_v47 = vld [vmem:[%s1541_s27 + $0x30] sm:$0xff]  ;;  %v526_v49 = vld [vmem:[%s1907_s3 + $0x18] sm:$0xff] }
  0x4c   : > { %547 = vmatpush.msra.mxu1 %v534_v23  ;;  %v595_v50 = vld [vmem:[%s1908_s5 + $0x18] sm:$0xff]  ;;  %v525_v52 = vld [vmem:[%s1907_s3 + $0x10] sm:$0xff]  ;;  %v524_v55 = vld [vmem:[%s1907_s3 + $0x8] sm:$0xff] }
  0x4d   : > { %677 = vmatpush.msra.mxu3 %v603_v24  ;;  %638 = vmatpush.msra.mxu2 %v625_v31  ;;  %v619_v51 = vld [vmem:[%s1865_s6 + $0x18] sm:$0xff]  ;;  %v594_v53 = vld [vmem:[%s1908_s5 + $0x10] sm:$0xff]  ;;  %v593_v57 = vld [vmem:[%s1908_s5 + $0x8] sm:$0xff] }
  0x4e   : > { %548 = vmatpush.msra.mxu1 %v533_v26  ;;  %v440_v54 = vld [vmem:[%s1541_s27 + $0x38] sm:$0xff]  ;;  %v618_v56 = vld [vmem:[%s1865_s6 + $0x10] sm:$0xff]  ;;  %v523_v58 = vld [vmem:[%s1907_s3] sm:$0xff]  ;;  %s1910_s27 = sld [smem:[#allocation22_spill]] }
  0x4f   : > { %678 = vmatpush.msra.mxu3 %v602_v27  ;;  %639 = vmatpush.msra.mxu2 %v624_v35  ;;  %v617_v59 = vld [vmem:[%s1865_s6 + $0x8] sm:$0xff]  ;;  %v592_v60 = vld [vmem:[%s1908_s5] sm:$0xff] }
  0x50   : > { %549 = vmatpush.msra.mxu1 %v532_v29  ;;  %v616_v61 = vld [vmem:[%s1865_s6] sm:$0xff] }
  0x51   : > { %679 = vmatpush.msra.mxu3 %v601_v30  ;;  %640 = vmatpush.msra.mxu2 %v623_v38  ;;  %v1175_v62 = vld [vmem:[%s1909_s2] ss:$0 sm:$0xff] }
  0x52   : > { %1054 = vmatmul.msk.f32.gmra.mxu0 %vm449_vm1, %v434_v7  ;;  %550 = vmatpush.msra.mxu1 %v531_v32 }
  0x53   : > { %680 = vmatpush.msra.mxu3 %v600_v33  ;;  %641 = vmatpush.msra.mxu2 %v622_v41 }
  0x54   : > { %551 = vmatpush.msra.mxu1 %v530_v36  ;;  %v1176_v23 = vld [vmem:[%s1910_s27] ss:$0 sm:$0xff] }
  0x55   : > { %681 = vmatpush.msra.mxu3 %v599_v37  ;;  %642 = vmatpush.msra.mxu2 %v621_v44 }
  0x56   : > { %552 = vmatpush.msra.mxu1 %v529_v39 }
  0x57   : > { %682 = vmatpush.msra.mxu3 %v598_v40  ;;  %643 = vmatpush.msra.mxu2 %v620_v48 }
  0x58   : > { %553 = vmatpush.msra.mxu1 %v528_v42 }
  0x59   : > { %683 = vmatpush.msra.mxu3 %v597_v43  ;;  %644 = vmatpush.msra.mxu2 %v619_v51 }
  0x5a   : > { %1055 = vmatmul.msk.f32.gmra.mxu0 %vm449_vm1, %v435_v8  ;;  %554 = vmatpush.msra.mxu1 %v527_v45 }
  0x5b   : > { %684 = vmatpush.msra.mxu3 %v596_v46  ;;  %645 = vmatpush.msra.mxu2 %v618_v56  ;;  %v729_v46 = vlaneseq }
  0x5c   : > { %555 = vmatpush.msra.mxu1 %v526_v49 }
  0x5d   : > { %685 = vmatpush.msra.mxu3 %v595_v50  ;;  %646 = vmatpush.msra.mxu2 %v617_v59  ;;  %v730_v51 = vshrl.u32 %v729_v46, 7 }
  0x5e   : > { %556 = vmatpush.msra.mxu1 %v525_v52 }
  0x5f   : > { %686 = vmatpush.msra.mxu3 %v594_v53  ;;  %647 = vmatpush.msra.mxu2 %v616_v61  ;;  %v735_v52 = vadd.s32 40, %v730_v51  ;;  %v731_v53 = vadd.s32 8, %v730_v51  ;;  %v736_v56 = vadd.s32 48, %v730_v51  ;;  %v732_v59 = vadd.s32 16, %v730_v51 }
  0x60   : > { %557 = vmatpush.msra.mxu1 %v524_v55 }
  0x61   : > { %687 = vmatpush.msra.mxu3 %v593_v57  ;;  %v738_v57 = vstv %s1062_s1 }
  0x62   : > { %1056 = vmatmul.msk.f32.gmra.mxu0 %vm449_vm1, %v436_v9  ;;  %558 = vmatpush.msra.mxu1 %v523_v58  ;;  %v744_v61 = vadd.s32 %v738_v57, %v735_v52 }
  0x63   : > { %688 = vmatpush.msra.mxu3 %v592_v60  ;;  %v733_v60 = vadd.s32 24, %v730_v51 }
  0x64   : > { %vm752_vm2 = vcmp.lt.s32.totalorder %v744_v61, 200 }
  0x6a   : > { %1057 = vmatmul.msk.f32.gmra.mxu0 %vm449_vm1, %v437_v21 }
  0x72   : > { %1058 = vmatmul.msk.f32.gmra.mxu0 %vm449_vm1, %v438_v34 }
  0x7a   : > { %1059 = vmatmul.msk.f32.gmra.mxu0 %vm449_vm1, %v439_v47 }
  0x82   : > { %1060 = vmatmul.msk.f32.gmra.mxu0 %vm449_vm1, %v440_v54  ;;  %v734_v54 = vadd.s32 32, %v730_v51 }
  0xc7   : > { %v491_v63 = vpop.f32.mrf.mxu0 }
  0xc8   : > { %v492_v0 = vadd.f32 %v1175_v62, %v491_v63 }
  0xca   : > { %515 = vst [vmem:[%s1548_s16] sm:$0xff] %v492_v0  ;;  %559 = vmatmul.f32.vlgmr.msra.gmra.mxu1 %v492_v0  ;;  %689 = vmatmul.f32.vlgmr.msra.gmra.mxu3 %v492_v0  ;;  %v608_v1 = vmul.f32 %v492_v0, %v492_v0  ;;  %v1177_v0 = vld [vmem:[%s1911_s22] ss:$0 sm:$0xff] }
  0xcc   : > { %648 = vmatmul.f32.vlgmr.msra.gmra.mxu2 %v608_v1 }
  0xcf   : > { %v494_v2 = vpop.f32.mrf.mxu0 }
  0xd0   : > { %v495_v3 = vadd.f32 %v1175_v62, %v494_v2 }
  0xd2   : > { %516 = vst [vmem:[%s1548_s16 + $0x8] sm:$0xff] %v495_v3  ;;  %562 = vmatmul.f32.gmra.mxu1 %v495_v3  ;;  %692 = vmatmul.f32.gmra.mxu3 %v495_v3  ;;  %v609_v4 = vmul.f32 %v495_v3, %v495_v3 }
  0xd4   : > { %651 = vmatmul.f32.gmra.mxu2 %v609_v4 }
  0xd7   : > { %v497_v5 = vpop.f32.mrf.mxu0 }
  0xd8   : > { %v498_v6 = vadd.f32 %v1175_v62, %v497_v5  ;;  %v740_v5 = vadd.s32 %v738_v57, %v731_v53 }
  0xda   : > { %517 = vst [vmem:[%s1548_s16 + $0x10] sm:$0xff] %v498_v6  ;;  %565 = vmatmul.f32.gmra.mxu1 %v498_v6  ;;  %695 = vmatmul.f32.gmra.mxu3 %v498_v6  ;;  %v610_v7 = vmul.f32 %v498_v6, %v498_v6  ;;  %v743_v6 = vadd.s32 %v738_v57, %v734_v54  ;;  %vm748_vm3 = vcmp.lt.s32.totalorder %v740_v5, 200 }
  0xdc   : > { %654 = vmatmul.f32.gmra.mxu2 %v610_v7  ;;  %v745_v7 = vadd.s32 %v738_v57, %v736_v56  ;;  %vm751_vm4 = vcmp.lt.s32.totalorder %v743_v6, 200 }
  0xde   : > { %vm753_vm5 = vcmp.lt.s32.totalorder %v745_v7, 200 }
  0xdf   : > { %v500_v8 = vpop.f32.mrf.mxu0 }
  0xe0   : > { %v501_v9 = vadd.f32 %v1175_v62, %v500_v8  ;;  %v737_v8 = vadd.s32 56, %v730_v51 }
  0xe2   : > { %518 = vst [vmem:[%s1548_s16 + $0x18] sm:$0xff] %v501_v9  ;;  %568 = vmatmul.f32.gmra.mxu1 %v501_v9  ;;  %698 = vmatmul.f32.gmra.mxu3 %v501_v9  ;;  %v611_v10 = vmul.f32 %v501_v9, %v501_v9 }
  0xe4   : > { %657 = vmatmul.f32.gmra.mxu2 %v611_v10 }
  0xe7   : > { %v503_v11 = vpop.f32.mrf.mxu0 }
  0xe8   : > { %v504_v12 = vadd.f32 %v1175_v62, %v503_v11 }
  0xea   : > { %519 = vst [vmem:[%s1548_s16 + $0x20] sm:$0xff] %v504_v12  ;;  %571 = vmatmul.f32.gmra.mxu1 %v504_v12  ;;  %701 = vmatmul.f32.gmra.mxu3 %v504_v12  ;;  %v612_v13 = vmul.f32 %v504_v12, %v504_v12 }
  0xec   : > { %660 = vmatmul.f32.gmra.mxu2 %v612_v13  ;;  %v739_v13 = vadd.s32 %v738_v57, %v730_v51 }
  0xee   : > { %vm747_vm6 = vcmp.lt.s32.totalorder %v739_v13, 200 }
  0xef   : > { %v506_v14 = vpop.f32.mrf.mxu0 }
  0xf0   : > { %v507_v15 = vadd.f32 %v1175_v62, %v506_v14  ;;  %v741_v14 = vadd.s32 %v738_v57, %v732_v59 }
  0xf2   : > { %520 = vst [vmem:[%s1548_s16 + $0x28] sm:$0xff] %v507_v15  ;;  %574 = vmatmul.f32.gmra.mxu1 %v507_v15  ;;  %704 = vmatmul.f32.gmra.mxu3 %v507_v15  ;;  %v613_v16 = vmul.f32 %v507_v15, %v507_v15  ;;  %v742_v15 = vadd.s32 %v738_v57, %v733_v60  ;;  %vm749_vm8 = vcmp.lt.s32.totalorder %v741_v14, 200 }
  0xf4   : > { %663 = vmatmul.f32.gmra.mxu2 %v613_v16  ;;  %vm750_vm9 = vcmp.lt.s32.totalorder %v742_v15, 200 }
  0xf7   : > { %v509_v17 = vpop.f32.mrf.mxu0 }
  0xf8   : > { %v510_v18 = vadd.f32 %v1175_v62, %v509_v17 }
  0xfa   : > { %521 = vst [vmem:[%s1548_s16 + $0x30] sm:$0xff] %v510_v18  ;;  %577 = vmatmul.f32.gmra.mxu1 %v510_v18  ;;  %707 = vmatmul.f32.gmra.mxu3 %v510_v18  ;;  %v614_v19 = vmul.f32 %v510_v18, %v510_v18 }
  0xfc   : > { %666 = vmatmul.f32.gmra.mxu2 %v614_v19  ;;  %v746_v19 = vadd.s32 %v738_v57, %v737_v8 }
  0xfe   : > { %vm754_vm10 = vcmp.lt.s32.totalorder %v746_v19, 200 }
  0xff   : > { %v512_v20 = vpop.f32.mrf.mxu0 }
 0x100   : > { %v513_v21 = vadd.f32 %v1175_v62, %v512_v20 }
 0x102   : > { %522 = vst [vmem:[%s1548_s16 + $0x38] sm:$0xff] %v513_v21  ;;  %580 = vmatmul.f32.gmra.mxu1 %v513_v21  ;;  %710 = vmatmul.f32.gmra.mxu3 %v513_v21  ;;  %v615_v22 = vmul.f32 %v513_v21, %v513_v21 }
 0x104   : > { %669 = vmatmul.f32.gmra.mxu2 %v615_v22 }
 0x147   : > { %v560_v24 = vpop.f32.mrf.mxu1 }
 0x148   : > { %v561_v25 = vadd.f32 %v1176_v23, %v560_v24 }
 0x14a   : > { %584 = vst.msk [vmem:[%s1546_s7] sm:$0xff] %vm449_vm1, %v561_v25 }
 0x14d   : > { %v690_v26 = vpop.f32.mrf.mxu3 }
 0x14f   : > { %v563_v27 = vpop.f32.mrf.mxu1  ;;  %v649_v28 = vpop.f32.mrf.mxu2 }
 0x150   : > { %v564_v29 = vadd.f32 %v1176_v23, %v563_v27  ;;  %v691_v9 = vadd.f32 %v690_v26, %v649_v28 }
 0x152   : > { %585 = vst.msk [vmem:[%s1546_s7 + $0x8] sm:$0xff] %vm449_vm1, %v564_v29  ;;  %v718_v20 = vadd.f32 %v1177_v0, %v691_v9 }
 0x155   : > { %v693_v30 = vpop.f32.mrf.mxu3 }
 0x157   : > { %v566_v31 = vpop.f32.mrf.mxu1  ;;  %v652_v32 = vpop.f32.mrf.mxu2 }
 0x158   : > { %v567_v33 = vadd.f32 %v1176_v23, %v566_v31  ;;  %v694_v1 = vadd.f32 %v693_v30, %v652_v32  ;;  %v755_v31 = vsel %vm747_vm6, %v718_v20, -inf }
 0x15a   : > { %586 = vst.msk [vmem:[%s1546_s7 + $0x10] sm:$0xff] %vm449_vm1, %v567_v33  ;;  %v719_v16 = vadd.f32 %v1177_v0, %v694_v1 }
 0x15c   : > { %v756_v26 = vsel %vm748_vm3, %v719_v16, -inf }
 0x15d   : > { %v696_v34 = vpop.f32.mrf.mxu3 }
 0x15f   : > { %v569_v35 = vpop.f32.mrf.mxu1  ;;  %v655_v36 = vpop.f32.mrf.mxu2 }
 0x160   : > { %v570_v37 = vadd.f32 %v1176_v23, %v569_v35  ;;  %v697_v10 = vadd.f32 %v696_v34, %v655_v36  ;;  %v765_v35 = vsel %vm763_vm7, %v756_v26, -inf }
 0x162   : > { %587 = vst.msk [vmem:[%s1546_s7 + $0x18] sm:$0xff] %vm449_vm1, %v570_v37  ;;  %v720_v21 = vadd.f32 %v1177_v0, %v697_v10 }
 0x164   : > { %v757_v32 = vsel %vm749_vm8, %v720_v21, -inf }
 0x165   : > { %v699_v38 = vpop.f32.mrf.mxu3 }
 0x167   : > { %v572_v39 = vpop.f32.mrf.mxu1  ;;  %v658_v40 = vpop.f32.mrf.mxu2 }
 0x168   : > { %v573_v41 = vadd.f32 %v1176_v23, %v572_v39  ;;  %v700_v11 = vadd.f32 %v699_v38, %v658_v40  ;;  %v764_v40 = vsel %vm763_vm7, %v755_v31, -inf }
 0x16a   : > { %588 = vst.msk [vmem:[%s1546_s7 + $0x20] sm:$0xff] %vm449_vm1, %v573_v41  ;;  %v721_v22 = vadd.f32 %v1177_v0, %v700_v11  ;;  %v766_v41 = vsel %vm763_vm7, %v757_v32, -inf }
 0x16c   : > { %v758_v33 = vsel %vm750_vm9, %v721_v22, -inf }
 0x16d   : > { %v702_v42 = vpop.f32.mrf.mxu3 }
 0x16f   : > { %v575_v43 = vpop.f32.mrf.mxu1  ;;  %v661_v44 = vpop.f32.mrf.mxu2 }
 0x170   : > { %v576_v45 = vadd.f32 %v1176_v23, %v575_v43  ;;  %v703_v2 = vadd.f32 %v702_v42, %v661_v44  ;;  %v767_v42 = vsel %vm763_vm7, %v758_v33, -inf }
 0x172   : > { %589 = vst.msk [vmem:[%s1546_s7 + $0x28] sm:$0xff] %vm449_vm1, %v576_v45  ;;  %v722_v17 = vadd.f32 %v1177_v0, %v703_v2 }
 0x174   : > { %v759_v27 = vsel %vm751_vm4, %v722_v17, -inf }
 0x175   : > { %v705_v47 = vpop.f32.mrf.mxu3  ;;  %v768_v36 = vsel %vm763_vm7, %v759_v27, -inf }
 0x176   : > { %v769_v44 = vmax.f32 %v764_v40, %v768_v36 }
 0x177   : > { %v578_v48 = vpop.f32.mrf.mxu1  ;;  %v664_v49 = vpop.f32.mrf.mxu2 }
 0x178   : > { %v579_v50 = vadd.f32 %v1176_v23, %v578_v48  ;;  %v706_v58 = vadd.f32 %v705_v47, %v664_v49 }
 0x17a   : > { %590 = vst.msk [vmem:[%s1546_s7 + $0x30] sm:$0xff] %vm449_vm1, %v579_v50  ;;  %v723_v12 = vadd.f32 %v1177_v0, %v706_v58 }
 0x17d   : > { %v708_v55 = vpop.f32.mrf.mxu3 }
 0x17f   : > { %v581_v62 = vpop.f32.mrf.mxu1  ;;  %v667_v63 = vpop.f32.mrf.mxu2 }
 0x180   : > { %v582_v3 = vadd.f32 %v1176_v23, %v581_v62  ;;  %v709_v4 = vadd.f32 %v708_v55, %v667_v63  ;;  %v760_v23 = vsel %vm752_vm2, %v723_v12, -inf  ;;  %v785_v55 = vld [vmem:[#allocation2] sm:$0x1] }
 0x181   : > { %v770_v30 = vsel %vm763_vm7, %v760_v23, -inf }
 0x182   : > { %591 = vst.msk [vmem:[%s1546_s7 + $0x38] sm:$0xff] %vm449_vm1, %v582_v3  ;;  %v724_v18 = vadd.f32 %v1177_v0, %v709_v4  ;;  %v771_v38 = vmax.f32 %v765_v35, %v770_v30 }
 0x184   : > { %v761_v28 = vsel %vm753_vm5, %v724_v18, -inf  ;;  %v776_v47 = vmax.f32 %v769_v44, %v771_v38 }
 0x185   : > { %v711_v24 = vpop.f32.mrf.mxu3  ;;  %v772_v37 = vsel %vm763_vm7, %v761_v28, -inf }
 0x186   : > { %v773_v45 = vmax.f32 %v766_v41, %v772_v37 }
 0x187   : > { %v670_v25 = vpop.f32.mrf.mxu2 }
 0x188   : > { %v712_v29 = vadd.f32 %v711_v24, %v670_v25 }
 0x18a   : > { %v725_v34 = vadd.f32 %v1177_v0, %v712_v29 }
 0x18c   : > { %v762_v39 = vsel %vm754_vm10, %v725_v34, -inf }
 0x18d   : > { %v774_v43 = vsel %vm763_vm7, %v762_v39, -inf }
 0x18e   : > { %v775_v46 = vmax.f32 %v767_v42, %v774_v43  ;;  %v789_v42 = vld [vmem:[#allocation3] sm:$0x1] }
 0x190   : > { %v777_v48 = vmax.f32 %v773_v45, %v775_v46 }
 0x192   : > { %v778_v49 = vmax.f32 %v776_v47, %v777_v48 }
 0x194   : > { %v779_v50 = vrot.slane %v778_v49, 4 }
 0x196   : > { %v780_v51 = vmax.f32 %v778_v49, %v779_v50 }
 0x198   : > { %v781_v52 = vrot.slane %v780_v51, 2 }
 0x19a   : > { %v782_v53 = vmax.f32 %v780_v51, %v781_v52 }
 0x19c   : > { %v783_v54 = vrot.slane %v782_v53, 1 }
 0x19e   : > { %v784_v56 = vmax.f32 %v782_v53, %v783_v54 }
 0x1a0   : > { %v786_v57 = vmax.f32 %v785_v55, %v784_v56 }
 0x1a2   : > { %vm787_vm12 = vcmp.gt.f32.partialorder %v786_v57, -inf  ;;  %845 = vst.msk [vmem:[#allocation2] sm:$0x1] %vm843_vm11, %v786_v57 }
 0x1a3   : > { %v788_v58 = vsel %vm787_vm12, %v786_v57, 0.0 }
 0x1a4   : > { %v795_v59 = vperm.slane %v788_v58, 0 }
 0x1a6   : > { %v797_v60 = vsub.f32 %v755_v31, %v795_v59  ;;  %v798_v61 = vsub.f32 %v756_v26, %v795_v59  ;;  %v799_v62 = vsub.f32 %v757_v32, %v795_v59  ;;  %v800_v63 = vsub.f32 %v758_v33, %v795_v59 }
 0x1a7   : > { %v801_v0 = vsub.f32 %v759_v27, %v795_v59  ;;  %v802_v3 = vsub.f32 %v760_v23, %v795_v59  ;;  %v803_v6 = vsub.f32 %v761_v28, %v795_v59  ;;  %v804_v8 = vsub.f32 %v762_v39, %v795_v59 }
 0x1a8   : > { %v805_v1 = vmul.f32 1.442695, %v797_v60  ;;  %v807_v2 = vmul.f32 1.442695, %v798_v61  ;;  %v809_v4 = vmul.f32 1.442695, %v799_v62  ;;  %v790_v28 = vsub.f32 %v785_v55, %v788_v58 }
 0x1a9   : > { %v811_v5 = vmul.f32 1.442695, %v800_v63  ;;  %v813_v7 = vmul.f32 1.442695, %v801_v0  ;;  %v815_v9 = vmul.f32 1.442695, %v802_v3 }
 0x1aa   : > { %1178 = vpow2.f32 %v805_v1  ;;  %v817_v10 = vmul.f32 1.442695, %v803_v6  ;;  %v819_v13 = vmul.f32 1.442695, %v804_v8  ;;  %v791_v34 = vmul.f32 1.442695, %v790_v28 }
 0x1ab   : > { %1180 = vpow2.f32 %v807_v2 }
 0x1ac   : > { %1182 = vpow2.f32 %v809_v4 }
 0x1ad   : > { %1184 = vpow2.f32 %v811_v5 }
 0x1ae   : > { %1186 = vpow2.f32 %v813_v7 }
 0x1af   : > { %1188 = vpow2.f32 %v815_v9 }
 0x1b0   : > { %v1179_v11 = vpop.eup %1178  ;;  %1190 = vpow2.f32 %v817_v10 }
 0x1b1   : > { %v1181_v12 = vpop.eup %1180  ;;  %v821_v14 = vsel %vm763_vm7, %v1179_v11, 0.0  ;;  %1192 = vpow2.f32 %v819_v13 }
 0x1b2   : > { %v1183_v15 = vpop.eup %1182  ;;  %v822_v16 = vsel %vm763_vm7, %v1181_v12, 0.0  ;;  %1194 = vpow2.f32 %v791_v34 }
 0x1b3   : > { %v1185_v17 = vpop.eup %1184  ;;  %v823_v18 = vadd.f32 %v822_v16, %v821_v14  ;;  %v824_v19 = vsel %vm763_vm7, %v1183_v15, 0.0 }
 0x1b4   : > { %v1187_v20 = vpop.eup %1186  ;;  %v826_v22 = vsel %vm763_vm7, %v1185_v17, 0.0 }
 0x1b5   : > { %v825_v21 = vadd.f32 %v824_v19, %v823_v18  ;;  %v1189_v23 = vpop.eup %1188  ;;  %v828_v25 = vsel %vm763_vm7, %v1187_v20, 0.0 }
 0x1b6   : > { %v1191_v26 = vpop.eup %1190  ;;  %v830_v29 = vsel %vm763_vm7, %v1189_v23, 0.0 }
 0x1b7   : > { %v827_v24 = vadd.f32 %v826_v22, %v825_v21  ;;  %v1193_v30 = vpop.eup %1192  ;;  %v832_v32 = vsel %vm763_vm7, %v1191_v26, 0.0 }
 0x1b8   : > { %v834_v35 = vsel %vm763_vm7, %v1193_v30, 0.0  ;;  %v1195_v41 = vpop.eup %1194 }
 0x1b9   : > { %v829_v27 = vadd.f32 %v828_v25, %v827_v24  ;;  %v793_v44 = vmul.f32 %v1195_v41, %v789_v42 }
 0x1bb   : > { %v831_v31 = vadd.f32 %v830_v29, %v829_v27 }
 0x1bd   : > { %v833_v33 = vadd.f32 %v832_v32, %v831_v31 }
 0x1bf   : > { %v835_v36 = vadd.f32 %v834_v35, %v833_v33 }
 0x1c1   : > { %v836_v37 = vrot.slane %v835_v36, 4 }
 0x1c3   : > { %v837_v38 = vadd.f32 %v836_v37, %v835_v36 }
 0x1c5   : > { %v838_v39 = vrot.slane %v837_v38, 2 }
 0x1c7   : > { %v839_v40 = vadd.f32 %v838_v39, %v837_v38 }
 0x1c9   : > { %v840_v43 = vrot.slane %v839_v40, 1 }
 0x1cb   : > { %v841_v45 = vadd.f32 %v840_v43, %v839_v40  ;;  %849 = sbr.rel (%p1063_p6) target bundleno = 483 (0x1e3), region = 60 }
 0x1cd   : > { %v842_v46 = vadd.f32 %v841_v45, %v793_v44 }
 0x1cf   : > { %844 = vst.msk [vmem:[#allocation3] sm:$0x1] %vm843_vm11, %v842_v46 }
 0x1d0   : > { %v850_v49 = vld [vmem:[#allocation2] sm:$0x1] }
 0x1d6   : > { %v851_v47 = vld [vmem:[#allocation3] sm:$0x1] }
 0x1d7   : > { %1196 = vlog2.f32 %v851_v47 }
 0x1dd   : > { %v1197_v48 = vpop.eup %1196 }
 0x1de   : > { %v853_v50 = vmul.f32 0.6931472, %v1197_v48 }
 0x1e0   : > { %v854_v51 = vadd.f32 %v853_v50, %v850_v49 }
 0x1e2   : > { %855 = vst.msk [vmem:[%s1552_s29] sm:$0x1] %vm843_vm11, %v854_v51 }
 0x1e3 PF: > { %s1912_s10 = sld [smem:[#allocation25_spill]]  ;;  %s888_s12 = sshll.u32 %s1548_s16, 4  ;;  %s889_s12 = int_to_ptr.vmem [resolvable:$true] %s888_s12 }
 0x1e4   : > { %s1914_s0 = sand.u32 1, %s1324_s17  }
 0x1e5   : > { %s864_s27 = scalar_lea.sflag [#allocation5], %s1914_s0 }
 0x1e9   : > { %s887_s19 = scalar_lea.hbm %s1912_s10, %s1062_s1  ;;  %s1218_s7 = scalar_lea.hbm %s1912_s10, 256 }
 0x1ea   : > { %s890_s25 = sshll.u32 %s887_s19, 4  ;;  %s891_s25 = int_to_ptr.hbm [resolvable:$true] %s890_s25 }
 0x1eb   : > { %s1212_s11 = sshra.s32 %s891_s25, 4  ;;  %s1213_s11 = int_to_ptr.hbm [resolvable:$true] %s1212_s11 }
 0x1ec   : > { %s1214_s28 = scalar_lea.hbm %s1213_s11, 64  ;;  %p1219_p11 = scmp.lt.s32.totalorder %s1213_s11, %s1912_s10 }
 0x1ed   : > { %p1215_p8 = scmp.ne.s32.totalorder %s1213_s11, %s1214_s28  ;;  %p1220_p0 = scmp.lt.s32.totalorder %s1218_s7, %s1214_s28 }
 0x1ef   : > { %p1216_p9 = pnand %p1215_p8, %p1484_p5  ;;  %p1221_p1 = por %p1220_p0, %p1219_p11 }
 0x1f1   : > { %p1217_p10 = pneg %p1216_p9 }
 0x1f3   : > { %p1222_p3 = pnand %p1221_p1, %p1217_p10 }
 0x1f5   : > { %1225 = shalt.err (!%p1222_p3)
}
 0x1f6   : > { %s1352_s16 = smov 128   ;;  %s1353_s1 = smov 8  }
 0x1f7   : > { %1071 = dma.vmem_to_hbm [thread:$0]  (%p1484_p5), %s889_s12, 1024, %s891_s25, %s864_s27, %s1352_s16, %s1352_s16, %s1353_s1  }
 0x1f8   : > { %s1915_s30 = sld [smem:[#allocation26_spill]]  ;;  %s904_s3 = sshll.u32 %s1552_s29, 4  ;;  %s905_s3 = int_to_ptr.vmem [resolvable:$true] %s904_s3 }
 0x1f9   : > { %s1916_s11 = sand.u32 1, %s1312_s14  }
 0x1fa   : > { %s869_s28 = scalar_lea.sflag [#allocation7], %s1916_s11 }
 0x1fe   : > { %s902_s22 = scalar_lea.hbm %s1915_s30, %s1336_s20  ;;  %s1246_s12 = scalar_lea.hbm %s1915_s30, 2 }
 0x1ff   : > { %s906_s2 = sshll.u32 %s902_s22, 4  ;;  %s907_s2 = int_to_ptr.hbm [resolvable:$true] %s906_s2 }
 0x200   : > { %s1240_s7 = sshra.s32 %s907_s2, 4  ;;  %s1241_s7 = int_to_ptr.hbm [resolvable:$true] %s1240_s7 }
 0x201   : > { %s1242_s26 = scalar_lea.hbm %s1241_s7, 1  ;;  %p1247_p5 = scmp.lt.s32.totalorder %s1241_s7, %s1915_s30 }
 0x202   : > { %p1243_p2 = scmp.ne.s32.totalorder %s1241_s7, %s1242_s26  ;;  %p1248_p8 = scmp.lt.s32.totalorder %s1246_s12, %s1242_s26 }
 0x204   : > { %p1244_p4 = pnand %p1243_p2, %p1517_p12  ;;  %p1249_p9 = por %p1248_p8, %p1247_p5 }
 0x206   : > { %p1245_p6 = pneg %p1244_p4 }
 0x208   : > { %p1250_p10 = pnand %p1249_p9, %p1245_p6 }
 0x20a   : > { %1253 = shalt.err (!%p1250_p10)
}
 0x20b   : > { %1072 = dma.vmem_to_hbm [thread:$0]  (%p1517_p12), %s905_s3, 16, %s907_s2, %s869_s28  }
 0x20c PF: > { %s1917_s20 = sld [smem:[#allocation10_spill]]  ;;  %p1082_p11 = scmp.ge.s32.totalorder %s1348_s23, 2 }
 0x20e   : > { %p1076_p0 = pnand %p1082_p11, %p1496_p7 }
 0x210   : > { %p1077_p1 = pneg %p1076_p0 }
 0x212   : > { %s928_s16 = sand.u32 1, %s1917_s20  }
 0x213   : > { %s929_s5 = scalar_lea.sflag [#allocation5], %s928_s16 }
 0x214   : > { %1299 = dma.done.wait (%p1077_p1), %s929_s5, 1024  }
 0x215   : > { %1301 = vsyncadd (%p1077_p1), %s929_s5, 4294966272  ;;  %s938_s1 = sand.u32 1, %s1308_s13   ;;  %p1079_p3 = pnand %p1082_p11, %p1523_p13 }
 0x216   : > { %s939_s4 = scalar_lea.sflag [#allocation7], %s938_s1 }
 0x217   : > { %p1080_p2 = pneg %p1079_p3 }
 0x219   : > { %1303 = dma.done.wait (%p1080_p2), %s939_s4, 16  }
 0x21a   : > { %1305 = vsyncadd (%p1080_p2), %s939_s4, 4294967280  ;;  %s27_s23 = sadd.s32 1, %s1348_s23   ;;  %s1919_s3 = sld [smem:[#allocation17_spill]] }
 0x21b   : > { %p24_p12 = scmp.ge.s32.totalorder %s27_s23, 6   ;;  %s1920_s19 = sld [smem:[#allocation11_spill]] }
 0x21c   : > { %s1921_s20 = sld [smem:[#allocation12_spill]]  ;;  %s1924_s13 = smov %s1312_s14 }
 0x21d   : > { %s1922_s21 = sld [smem:[#allocation13_spill]]  ;;  %s1925_s14 = smov %s1316_s15 }
 0x21e   : > { %s1923_s22 = sld [smem:[#allocation15_spill]]  ;;  %s1926_s15 = smov %s1510_s9 }
 0x21f   : > { %s1927_s16 = smov %s1324_s17  ;;  %s1928_s17 = smov %s1328_s18 }
 0x220   : > { %s1929_s18 = smov %s1919_s3  ;;  %26 = sbr.rel (!%p24_p12) target bundleno = 19 (0x13), region = 124 }
 0x225   :  { %944 = vsyncpa [#allocation5], 1 }
 0x226   :  { %946 = vsyncpa [#allocation5 + $0x1], 1 }
 0x227   :  { %947 = vsyncpa [#allocation7], 1 }
 0x228   :  { %949 = vsyncpa [#allocation7 + $0x1], 1 }

</bundles_post_ra>
